<compile_context>
chip_gen: v7x
topology: tpu7x:2x2x1
jax: 0.10.0
libtpu: 0.0.40
codegen_flags: <defaults>
</compile_context>

<pallas_src>
import functools

import jax
import jax.numpy as jnp
from jax.experimental import pallas as pl
from jax.experimental.pallas import tpu as pltpu


# ---------------------------------------------------------------------------
# Kernel.  Per grid step it sees:
#   xd_ref, xe_ref : (1, Cin, TM)   decoder / encoder token tiles (lanes = TM)
#   wq_ref, wk_ref : (Cout, Cin)    BN-scale-folded, transposed conv weights
#   wa_ref         : (Cout, Cout)   BN-scale-folded attention conv weight
#   bqk_ref        : (Cout, 1)      merged query+key shift (f32)
#   ba_ref         : (Cout, 1)      attention shift (f32)
#   out_ref        : (1, Cin, TM)   gated encoder tokens
# ---------------------------------------------------------------------------
def _attention_block_kernel(xd_ref, xe_ref, wq_ref, wk_ref, wa_ref,
                            bqk_ref, ba_ref, out_ref):
    xd = xd_ref[0]            # (Cin, TM) in the input dtype (bf16 stays bf16)
    xe = xe_ref[0]

    # query / key 1x1 convs: (Cout, Cin) @ (Cin, TM) -> (Cout, TM), f32 acc
    q = jnp.dot(wq_ref[...], xd, preferred_element_type=jnp.float32)
    k = jnp.dot(wk_ref[...], xe, preferred_element_type=jnp.float32)

    # relu(query + key) with the merged folded bias
    a = jnp.maximum(q + k + bqk_ref[...], 0.0)                 # (Cout, TM) f32

    # attention 1x1 conv + folded BN shift + sigmoid
    logits = jnp.dot(wa_ref[...], a.astype(wa_ref.dtype),
                     preferred_element_type=jnp.float32) + ba_ref[...]
    mask = jax.nn.sigmoid(logits)                              # (Cout, TM) f32

    # gate the (cropped) encoder tokens; Cin == Cout so this is elementwise
    out_ref[0] = (xe.astype(jnp.float32) * mask).astype(out_ref.dtype)


@functools.partial(jax.jit, static_argnames=("tile_m",))
def _run_pallas(xd_tok, xe_tok, wq, wk, wa, bqk, ba, *, tile_m):
    N, Cin, M = xd_tok.shape
    Cout = wq.shape[0]
    grid = (N, pl.cdiv(M, tile_m))          # ragged last token block is masked

    tok_spec = pl.BlockSpec((1, Cin, tile_m), lambda b, i: (b, 0, i))
    # Constant-index blocks: Pallas does not re-issue their DMA between steps.
    wqk_spec = pl.BlockSpec((Cout, Cin), lambda b, i: (0, 0))
    wa_spec = pl.BlockSpec((Cout, Cout), lambda b, i: (0, 0))
    bias_spec = pl.BlockSpec((Cout, 1), lambda b, i: (0, 0))

    # VMEM budget: 3 token arrays x 2 buffers x tile + 2x weights/biases.
    itemsize = xd_tok.dtype.itemsize
    weight_bytes = ((wq.size + wk.size + wa.size) * wq.dtype.itemsize
                    + (bqk.size + ba.size) * 4)
    vmem_need = 3 * 2 * Cin * tile_m * itemsize + 2 * weight_bytes + (1 << 16)
    cp_kwargs = dict(dimension_semantics=("parallel", "parallel"))
    if vmem_need > (30 << 20):
        # Only relevant once channels / tile_m scale up (e.g. v7x's 32 MiB
        # scoped default); harmless no-op for the small shapes below.
        cp_kwargs["vmem_limit_bytes"] = int(min(vmem_need * 5 // 4, 100 << 20))

    return pl.pallas_call(
        _attention_block_kernel,
        out_shape=jax.ShapeDtypeStruct((N, Cin, M), xe_tok.dtype),
        grid_spec=pltpu.PrefetchScalarGridSpec(
            num_scalar_prefetch=0,
            grid=grid,
            in_specs=[tok_spec, tok_spec,
                      wqk_spec, wqk_spec, wa_spec,
                      bias_spec, bias_spec],
            out_specs=tok_spec,
        ),
        compiler_params=pltpu.CompilerParams(**cp_kwargs),
    )(xd_tok, xe_tok, wq, wk, wa, bqk, ba)


def _choose_tile_m(M, Cin, itemsize, requested):
    """Pick a lane-dense token tile: multiple of 128, clamped to M and to a
    ~12 MiB double-buffer budget for the 3 token operands."""
    if M <= 128:
        return M                      # full-extent block is always legal
    budget = 12 << 20
    cap = max(128, budget // (6 * max(Cin, 1) * itemsize))
    tm = min(int(requested), int(cap))
    tm = max(128, (tm // 128) * 128)
    if M <= tm:
        return M
    return tm


def attention_block_forward(params, decoder_input, encoder_input, tile_m=1024):
    """decoder_input, encoder_input: NCHW arrays (PyTorch convention)."""
    # Crop both tensors to the common spatial extent.  1x1 convs are spatially
    # pointwise, so cropping the inputs == PyTorch's crop of query/key.
    H = min(decoder_input.shape[2], encoder_input.shape[2])
    W = min(decoder_input.shape[3], encoder_input.shape[3])
    xd = decoder_input[:, :, :H, :W]
    xe = encoder_input[:, :, :H, :W]

    N, Cin = xd.shape[0], xd.shape[1]
    Cout = params["wq_t"].shape[0]
    # PyTorch broadcast `encoder_input * mask` requires Cin == Cout
    assert Cin == Cout, "elementwise gating requires input_channels == output_channels"

    M = H * W
    # NCHW -> (N, C, H*W): a pure reshape, no transpose / extra HBM pass.
    xd_tok = xd.reshape(N, Cin, M)
    xe_tok = xe.reshape(N, Cin, M)

    tm = _choose_tile_m(M, Cin, jnp.dtype(xd_tok.dtype).itemsize, tile_m)

    out_tok = _run_pallas(
        xd_tok, xe_tok,
        params["wq_t"], params["wk_t"], params["wa_t"],
        params["bqk"], params["ba"],
        tile_m=tm,
    )
    return out_tok.reshape(N, Cin, H, W)


# ---------------------------------------------------------------------------
# Parameter construction / BN folding
# ---------------------------------------------------------------------------
def init_raw_params(key, input_channels, output_channels, dtype=jnp.float32):
    """PyTorch-style raw parameters: conv weights/biases + eval-mode BN stats."""
    ks = jax.random.split(key, 15)
    cin, cout = input_channels, output_channels

    def conv_w(k, ci, co):
        bound = 1.0 / (ci ** 0.5)
        return jax.random.uniform(k, (ci, co), dtype, -bound, bound)

    def conv_b(k, ci, co):
        bound = 1.0 / (ci ** 0.5)
        return jax.random.uniform(k, (co,), dtype, -bound, bound)

    return {
        "wq": conv_w(ks[0], cin, cout), "bq": conv_b(ks[1], cin, cout),
        "wk": conv_w(ks[2], cin, cout), "bk": conv_b(ks[3], cin, cout),
        "wa": conv_w(ks[4], cout, cout), "ba": conv_b(ks[5], cout, cout),
        # BatchNorm (eval mode): gamma/beta + running mean/var
        "gq": 1.0 + 0.1 * jax.random.normal(ks[6], (cout,), dtype),
        "gk": 1.0 + 0.1 * jax.random.normal(ks[7], (cout,), dtype),
        "ga": 1.0 + 0.1 * jax.random.normal(ks[8], (cout,), dtype),
        "betaq": 0.1 * jax.random.normal(ks[9], (cout,), dtype),
        "betak": 0.1 * jax.random.normal(ks[10], (cout,), dtype),
        "betaa": 0.1 * jax.random.normal(ks[11], (cout,), dtype),
        "mq": 0.1 * jax.random.normal(ks[12], (cout,), dtype),
        "mk": 0.1 * jax.random.normal(ks[13], (cout,), dtype),
        "ma": 0.1 * jax.random.normal(ks[14], (cout,), dtype),
        "vq": jnp.ones((cout,), dtype),
        "vk": jnp.ones((cout,), dtype),
        "va": jnp.ones((cout,), dtype),
    }


def fold_params(raw, dtype=jnp.float32, eps=1e-5):
    """Fold eval-mode BN into the conv weights (transposed for the kernel)."""
    # TODO(synk): training-mode BatchNorm (per-batch statistics) is not folded;
    # only eval/inference semantics are implemented.
    def fold(w, b, gamma, beta, mean, var):
        # BN(x @ w + b) = (x @ w) * s + t ;  s = gamma/sqrt(var+eps),
        # t = (b - mean) * s + beta.  Fold s into the transposed weight rows.
        s = gamma / jnp.sqrt(var + eps)
        t = (b - mean) * s + beta
        w_t = (w * s[None, :]).T                 # (Cout, Cin)
        return w_t.astype(dtype), t.astype(jnp.float32)

    wq_t, tq = fold(raw["wq"], raw["bq"], raw["gq"], raw["betaq"], raw["mq"], raw["vq"])
    wk_t, tk = fold(raw["wk"], raw["bk"], raw["gk"], raw["betak"], raw["mk"], raw["vk"])
    wa_t, ta = fold(raw["wa"], raw["ba"], raw["ga"], raw["betaa"], raw["ma"], raw["va"])

    return {
        "wq_t": wq_t, "wk_t": wk_t, "wa_t": wa_t,
        "bqk": (tq + tk).reshape(-1, 1),        # merged query+key shift
        "ba": ta.reshape(-1, 1),
    }


# ---------------------------------------------------------------------------
# Pure-JAX reference implementing the un-folded PyTorch semantics (eval BN)
# ---------------------------------------------------------------------------
def _reference_forward(raw, decoder_input, encoder_input, eps=1e-5):
    def conv_bn(x, w, b, gamma, beta, mean, var):
        y = jnp.einsum("nchw,cd->ndhw", x, w) + b[None, :, None, None]
        s = gamma / jnp.sqrt(var + eps)
        return ((y - mean[None, :, None, None]) * s[None, :, None, None]
                + beta[None, :, None, None])

    query = conv_bn(decoder_input, raw["wq"], raw["bq"],
                    raw["gq"], raw["betaq"], raw["mq"], raw["vq"])
    key = conv_bn(encoder_input, raw["wk"], raw["bk"],
                  raw["gk"], raw["betak"], raw["mk"], raw["vk"])

    H = min(query.shape[2], key.shape[2])
    W = min(query.shape[3], key.shape[3])
    query = query[:, :, :H, :W]
    key = key[:, :, :H, :W]
    enc = encoder_input[:, :, :H, :W]

    a = jnp.maximum(query + key, 0.0)
    logits = conv_bn(a, raw["wa"], raw["ba"],
                     raw["ga"], raw["betaa"], raw["ma"], raw["va"])
    return enc * jax.nn.sigmoid(logits)


if __name__ == "__main__":
    key = jax.random.PRNGKey(0)
    k_dec, k_enc, k_par, k_dec2, k_enc2 = jax.random.split(key, 5)

    N, C = 2, 8
    # mismatched spatial extents to exercise the cropping path
    decoder_input = jax.random.normal(k_dec, (N, C, 16, 18), jnp.float32)
    encoder_input = jax.random.normal(k_enc, (N, C, 20, 16), jnp.float32)

    raw = init_raw_params(k_par, C, C)
    params = fold_params(raw)

    out = attention_block_forward(params, decoder_input, encoder_input)
    out = jax.block_until_ready(out)
    ref = _reference_forward(raw, decoder_input, encoder_input)
    assert out.shape == (N, C, 16, 16)
    assert jnp.allclose(out, ref, atol=2e-4, rtol=2e-4), float(jnp.max(jnp.abs(out - ref)))

    # second config: multi-tile token axis with a ragged last block (672 tokens,
    # tile 512) to verify the pad-free masked-tail path
    dec2 = jax.random.normal(k_dec2, (1, C, 24, 28), jnp.float32)
    enc2 = jax.random.normal(k_enc2, (1, C, 24, 28), jnp.float32)
    out2 = jax.block_until_ready(
        attention_block_forward(params, dec2, enc2, tile_m=512))
    ref2 = _reference_forward(raw, dec2, enc2)
    assert out2.shape == (1, C, 24, 28)
    assert jnp.allclose(out2, ref2, atol=2e-4, rtol=2e-4), float(jnp.max(jnp.abs(out2 - ref2)))

    print("KERNEL_OK")
</pallas_src>

<mosaic_0001>
module attributes {stable_mosaic.version = 11 : i64} {
  func.func @_attention_block_kernel(%arg0: i32, %arg1: i32, %arg2: memref<1x8x256xf32, #tpu.memory_space<vmem>>, %arg3: memref<1x8x256xf32, #tpu.memory_space<vmem>>, %arg4: memref<8x8xf32, #tpu.memory_space<vmem>>, %arg5: memref<8x8xf32, #tpu.memory_space<vmem>>, %arg6: memref<8x8xf32, #tpu.memory_space<vmem>>, %arg7: memref<8x1xf32, #tpu.memory_space<vmem>>, %arg8: memref<8x1xf32, #tpu.memory_space<vmem>>, %arg9: memref<1x8x256xf32, #tpu.memory_space<vmem>>) attributes {dimension_semantics = [#tpu.dimension_semantics<parallel>, #tpu.dimension_semantics<parallel>], iteration_bounds = array<i64: 2, 1>, scalar_prefetch = 0 : i64, scratch_operands = 0 : i64, tpu.core_type = #tpu.core_type<tc>, window_params = [{transform_indices = @transform_0, window_bounds = array<i64: 1, 8, 256>}, {transform_indices = @transform_1, window_bounds = array<i64: 1, 8, 256>}, {pipeline_mode = #tpu.pipeline_mode<synchronous>, transform_indices = @transform_2, window_bounds = array<i64: 8, 8>}, {pipeline_mode = #tpu.pipeline_mode<synchronous>, transform_indices = @transform_3, window_bounds = array<i64: 8, 8>}, {pipeline_mode = #tpu.pipeline_mode<synchronous>, transform_indices = @transform_4, window_bounds = array<i64: 8, 8>}, {pipeline_mode = #tpu.pipeline_mode<synchronous>, transform_indices = @transform_5, window_bounds = array<i64: 8, 1>}, {pipeline_mode = #tpu.pipeline_mode<synchronous>, transform_indices = @transform_6, window_bounds = array<i64: 8, 1>}, {transform_indices = @transform_7, window_bounds = array<i64: 1, 8, 256>}]} {
    %c0 = arith.constant 0 : index
    %c0_0 = arith.constant 0 : index
    %c0_1 = arith.constant 0 : index
    %0 = vector.load %arg2[%c0, %c0_0, %c0_1] : memref<1x8x256xf32, #tpu.memory_space<vmem>>, vector<1x8x256xf32>
    %1 = vector.shape_cast %0 : vector<1x8x256xf32> to vector<8x256xf32>
    %c0_2 = arith.constant 0 : index
    %c0_3 = arith.constant 0 : index
    %c0_4 = arith.constant 0 : index
    %2 = vector.load %arg3[%c0_2, %c0_3, %c0_4] : memref<1x8x256xf32, #tpu.memory_space<vmem>>, vector<1x8x256xf32>
    %3 = vector.shape_cast %2 : vector<1x8x256xf32> to vector<8x256xf32>
    %c0_5 = arith.constant 0 : index
    %c0_6 = arith.constant 0 : index
    %4 = vector.load %arg4[%c0_5, %c0_6] : memref<8x8xf32, #tpu.memory_space<vmem>>, vector<8x8xf32>
    %cst = arith.constant dense<0.000000e+00> : vector<8x256xf32>
    %5 = tpu.matmul %4, %1, %cst {dimension_numbers = #tpu.dot_dimension_numbers<[1], [0], [0], [1], [0, 0, 1, 1], [], []>} : vector<8x8xf32>, vector<8x256xf32>, vector<8x256xf32> -> vector<8x256xf32>
    %c0_7 = arith.constant 0 : index
    %c0_8 = arith.constant 0 : index
    %6 = vector.load %arg5[%c0_7, %c0_8] : memref<8x8xf32, #tpu.memory_space<vmem>>, vector<8x8xf32>
    %cst_9 = arith.constant dense<0.000000e+00> : vector<8x256xf32>
    %7 = tpu.matmul %6, %3, %cst_9 {dimension_numbers = #tpu.dot_dimension_numbers<[1], [0], [0], [1], [0, 0, 1, 1], [], []>} : vector<8x8xf32>, vector<8x256xf32>, vector<8x256xf32> -> vector<8x256xf32>
    %8 = arith.addf %5, %7 : vector<8x256xf32>
    %c0_10 = arith.constant 0 : index
    %c0_11 = arith.constant 0 : index
    %9 = vector.load %arg7[%c0_10, %c0_11] : memref<8x1xf32, #tpu.memory_space<vmem>>, vector<8x1xf32>
    %10 = vector.broadcast %9 : vector<8x1xf32> to vector<8x256xf32>
    %11 = arith.addf %8, %10 : vector<8x256xf32>
    %cst_12 = arith.constant 0.000000e+00 : f32
    %12 = vector.broadcast %cst_12 : f32 to vector<8x256xf32>
    %13 = arith.maximumf %11, %12 : vector<8x256xf32>
    %c0_13 = arith.constant 0 : index
    %c0_14 = arith.constant 0 : index
    %14 = vector.load %arg6[%c0_13, %c0_14] : memref<8x8xf32, #tpu.memory_space<vmem>>, vector<8x8xf32>
    %cst_15 = arith.constant dense<0.000000e+00> : vector<8x256xf32>
    %15 = tpu.matmul %14, %13, %cst_15 {dimension_numbers = #tpu.dot_dimension_numbers<[1], [0], [0], [1], [0, 0, 1, 1], [], []>} : vector<8x8xf32>, vector<8x256xf32>, vector<8x256xf32> -> vector<8x256xf32>
    %c0_16 = arith.constant 0 : index
    %c0_17 = arith.constant 0 : index
    %16 = vector.load %arg8[%c0_16, %c0_17] : memref<8x1xf32, #tpu.memory_space<vmem>>, vector<8x1xf32>
    %17 = vector.broadcast %16 : vector<8x1xf32> to vector<8x256xf32>
    %18 = arith.addf %15, %17 : vector<8x256xf32>
    %19 = arith.negf %18 : vector<8x256xf32>
    %20 = math.exp %19 : vector<8x256xf32>
    %cst_18 = arith.constant 1.000000e+00 : f32
    %21 = vector.broadcast %cst_18 : f32 to vector<8x256xf32>
    %22 = arith.addf %21, %20 : vector<8x256xf32>
    %23 = arith.divf %21, %22 : vector<8x256xf32>
    %24 = arith.mulf %3, %23 : vector<8x256xf32>
    %c0_19 = arith.constant 0 : index
    %c0_20 = arith.constant 0 : index
    %c0_21 = arith.constant 0 : index
    %25 = vector.load %arg9[%c0_19, %c0_20, %c0_21] : memref<1x8x256xf32, #tpu.memory_space<vmem>>, vector<1x8x256xf32>
    %26 = vector.shape_cast %25 : vector<1x8x256xf32> to vector<8x256xf32>
    %27 = vector.shape_cast %24 : vector<8x256xf32> to vector<1x8x256xf32>
    tpu.vector_store %arg9[%c0_19, %c0_20, %c0_21], %27 {strides = array<i32>} : memref<1x8x256xf32, #tpu.memory_space<vmem>>, vector<1x8x256xf32>,
    return
  }
  func.func @transform_0(%arg0: i32, %arg1: i32) -> (i32, i32, i32) {
    %c0_i32 = arith.constant 0 : i32
    %c0_i32_0 = arith.constant 0 : i32
    return %arg0, %c0_i32, %arg1 : i32, i32, i32
  }
  func.func @transform_1(%arg0: i32, %arg1: i32) -> (i32, i32, i32) {
    %c0_i32 = arith.constant 0 : i32
    %c0_i32_0 = arith.constant 0 : i32
    return %arg0, %c0_i32, %arg1 : i32, i32, i32
  }
  func.func @transform_2(%arg0: i32, %arg1: i32) -> (i32, i32) {
    %c0_i32 = arith.constant 0 : i32
    %c0_i32_0 = arith.constant 0 : i32
    %c0_i32_1 = arith.constant 0 : i32
    return %c0_i32, %c0_i32_0 : i32, i32
  }
  func.func @transform_3(%arg0: i32, %arg1: i32) -> (i32, i32) {
    %c0_i32 = arith.constant 0 : i32
    %c0_i32_0 = arith.constant 0 : i32
    %c0_i32_1 = arith.constant 0 : i32
    return %c0_i32, %c0_i32_0 : i32, i32
  }
  func.func @transform_4(%arg0: i32, %arg1: i32) -> (i32, i32) {
    %c0_i32 = arith.constant 0 : i32
    %c0_i32_0 = arith.constant 0 : i32
    %c0_i32_1 = arith.constant 0 : i32
    return %c0_i32, %c0_i32_0 : i32, i32
  }
  func.func @transform_5(%arg0: i32, %arg1: i32) -> (i32, i32) {
    %c0_i32 = arith.constant 0 : i32
    %c0_i32_0 = arith.constant 0 : i32
    %c0_i32_1 = arith.constant 0 : i32
    return %c0_i32, %c0_i32_0 : i32, i32
  }
  func.func @transform_6(%arg0: i32, %arg1: i32) -> (i32, i32) {
    %c0_i32 = arith.constant 0 : i32
    %c0_i32_0 = arith.constant 0 : i32
    %c0_i32_1 = arith.constant 0 : i32
    return %c0_i32, %c0_i32_0 : i32, i32
  }
  func.func @transform_7(%arg0: i32, %arg1: i32) -> (i32, i32, i32) {
    %c0_i32 = arith.constant 0 : i32
    %c0_i32_0 = arith.constant 0 : i32
    return %arg0, %c0_i32, %arg1 : i32, i32, i32
  }
}

</mosaic_0001>

<bundles_post_ra>
// kernel: _run_pallas.1
= control target key start
LH: loop header
LB: loop body
LE: loop exit
PB: predicated region body
PF: predicated region fallthrough
CT: control target
= control target key end

     0   :  { %s1290_s0 = inlined_call_operand.hbm [shape: f32[2,8,256], index: 0, kind: input, shape index: {}]   ;;  %s1291_s1 = inlined_call_operand.hbm [shape: f32[2,8,256], index: 1, kind: input, shape index: {}]   ;;  %s1292_s2 = inlined_call_operand.vmem [shape: f32[8,8], index: 2, kind: input, shape index: {}]   ;;  %s1293_s3 = inlined_call_operand.vmem [shape: f32[8,8], index: 3, kind: input, shape index: {}]   ;;  %s1294_s4 = inlined_call_operand.vmem [shape: f32[8,8], index: 4, kind: input, shape index: {}]   ;;  %s1295_s5 = inlined_call_operand.vmem [shape: f32[8,1], index: 5, kind: input, shape index: {}]   ;;  %s1296_s6 = inlined_call_operand.vmem [shape: f32[8,1], index: 6, kind: input, shape index: {}]   ;;  %s1297_s7 = inlined_call_operand.hbm [shape: f32[2,8,256], index: 7, kind: output, shape index: {}]  }
   0x1   :  { %1303 = sst [smem:[#allocation12_spill]] %s1290_s0 }
   0x2   :  { %12 = vsyncpa [#allocation3], 0 }
   0x3   :  { %14 = vsyncpa [#allocation3 + $0x1], 0 }
   0x4   :  { %15 = vsyncpa [#allocation6], 0 }
   0x5   :  { %17 = vsyncpa [#allocation6 + $0x1], 0 }
   0x6   :  { %18 = vsyncpa [#allocation4], 0 }
   0x7   :  { %20 = vsyncpa [#allocation4 + $0x1], 0  ;;  %s1047_s24 = smov 0   ;;  %s1049_s25 = smov 0  }
   0x8   :  { %s1051_s26 = smov 0   ;;  %s1053_s27 = smov 0  }
   0x9   :  { %s1055_s28 = smov 0   ;;  %s1057_s29 = smov 0  }
   0xa LB: > { %s747_s30 = sadd.s32 4294967295, %s1000_s29   ;;  %s748_s8 = sadd.s32 4294967294, %s1000_s29   ;;  %s1000_s29 = sphi %s1057_s29, %s26_s29   ;;  %s996_s28 = sphi %s1055_s28, %s1326_s28   ;;  %s992_s27 = sphi %s1053_s27, %s1325_s27   ;;  %s988_s26 = sphi %s1051_s26, %s1324_s26   ;;  %s984_s25 = sphi %s1049_s25, %s1323_s25   ;;  %s980_s24 = sphi %s1047_s24, %s1322_s24  }
   0xb   : > { %s38_s9 = sadd.s32 1, %s996_s28  ;;  %s47_s10 = sadd.s32 1, %s988_s26 }
   0xc   : > { %p40_p0 = scmp.ge.s32.totalorder %s38_s9, 2  ;;  %p54_p1 = scmp.ne.s32.totalorder %s988_s26, %s984_s25 }
   0xd   : > { %p55_p2 = scmp.eq.s32.totalorder %s1000_s29, 0  ;;  %p60_p3 = scmp.ne.s32.totalorder %s984_s25, %s980_s24 }
   0xe   : > { %s1328_s9 = smov (%p40_p0, %s38_s9), 0  ;;  %p61_p5 = scmp.eq.s32.totalorder %s747_s30, 0 }
   0xf   : > { %1304 = sst [smem:[#allocation11_spill]] %s1328_s9  ;;  %p1088_p4 = por %p55_p2, %p54_p1 }
  0x10   : > { %s42_s12 = ssub.s32 %s996_s28, %s1328_s9  ;;  %p219_p6 = scmp.eq.s32.totalorder %s747_s30, 1 }
  0x11   : > { %p45_p7 = scmp.eq.s32.totalorder %s42_s12, 0  ;;  %p1094_p8 = por %p61_p5, %p60_p3 }
  0x12   : > { %p1098_p9 = por %p219_p6, %p54_p1  ;;  %p225_p10 = scmp.eq.s32.totalorder %s748_s8, 1 }
  0x13   : > { %s1306_s13 = scalar_select %p1094_p8, 1, 0 }
  0x14   : > { %s1307_s14 = scalar_select %p1098_p9, 1, 0 }
  0x15   : > { %s1103_s15 = scalar_select %p45_p7, %s988_s26, %s47_s10  }
  0x16   : > { %p1105_p11 = por %p225_p10, %p60_p3  ;;  %p793_p13 = scmp.lt.s32.totalorder %s1000_s29, 2 }
  0x17   : > { %s1112_s17 = sand.u32 1, %s988_s26   ;;  %s1299_s19 = sshll.u32 %s996_s28, 8 }
  0x18   : > { %s1308_s16 = scalar_select %p1105_p11, 1, 0 }
  0x19   : > { %s1298_s18 = sshll.u32 %s1112_s17, 4  ;;  %s1309_s0 = sld [smem:[#allocation12_spill]] }
  0x1a   : > { %s264_s23 = scalar_lea.vmem [#allocation2], %s1298_s18  ;;  %p1129_p0 = pnand %p793_p13, %p1088_p4 }
  0x1b   : > { %s274_s30 = sshll.u32 %s264_s23, 4  ;;  %s261_s10 = scalar_lea.sflag [#allocation3], %s1112_s17  ;;  %s1125_s30 = int_to_ptr.vmem [resolvable:$true] %s274_s30 }
  0x1c   : > { %p856_p5 = pneg %p1129_p0 }
  0x1f   : > { %s1121_s22 = scalar_lea.hbm %s1309_s0, %s1299_s19  ;;  %s859_s11 = scalar_lea.hbm %s1309_s0, 512 }
  0x20   : > { %s854_s12 = scalar_lea.hbm %s1121_s22, 256  ;;  %p860_p4 = scmp.lt.u32.totalorder %s1121_s22, %s1309_s0 }
  0x21   : > { %p855_p3 = scmp.ne.s32.totalorder %s1121_s22, %s854_s12  ;;  %p861_p10 = scmp.lt.u32.totalorder %s859_s11, %s854_s12 }
  0x22   : > { %p863_p12 = scmp.lt.u32.totalorder %s854_s12, %s1121_s22 }
  0x23   : > { %p857_p6 = pnand %p856_p5, %p855_p3  ;;  %p862_p13 = por %p861_p10, %p860_p4 }
  0x25   : > { %p858_p7 = pneg %p857_p6  ;;  %p864_p1 = por %p863_p12, %p862_p13 }
  0x27   : > { %p865_p2 = pnand %p864_p1, %p858_p7 }
  0x29   : > { %868 = shalt.err (!%p865_p2)
}
  0x2a   : > { %s869_s19 = scalar_lea.vmem %s1125_s30, 256  ;;  %s1002_s20 = smov [#allocation2]  }
  0x2b   : > { %p870_p3 = scmp.ne.s32.totalorder %s1125_s30, %s869_s19  ;;  %s874_s21 = sshll.u32 %s1002_s20, 4  ;;  %s875_s21 = int_to_ptr.vmem [resolvable:$false] %s874_s21 }
  0x2c   : > { %s876_s18 = scalar_lea.vmem %s875_s21, 512  ;;  %p877_p9 = scmp.lt.s32.totalorder %s1125_s30, %s875_s21 }
  0x2d   : > { %p872_p6 = pnand %p870_p3, %p856_p5  ;;  %p878_p4 = scmp.lt.s32.totalorder %s876_s18, %s869_s19 }
  0x2f   : > { %p873_p11 = pneg %p872_p6  ;;  %p879_p10 = por %p878_p4, %p877_p9 }
  0x31   : > { %p880_p12 = pnand %p879_p10, %p873_p11 }
  0x33   : > { %883 = shalt.err (!%p880_p12)
}
  0x34   : > { %785 = dma.hbm_to_vmem [thread:$0]  (!%p1129_p0), %s1121_s22, 256, %s1125_s30, %s261_s10  }
  0x35   : > { %p1311_p1 = scmp.lt.s32.totalorder %s1000_s29, 3  ;;  %p1312_p2 = scmp.ge.s32.totalorder %s1000_s29, 1 }
  0x36   : > { %s1314_s19 = sshll.u32 %s996_s28, 8  ;;  %s1315_s21 = sshll.u32 %s1112_s17, 4 }
  0x37   : > { %p1165_p7 = pnand %p1312_p2, %p1311_p1  ;;  %s1174_s20 = scalar_lea.hbm %s1291_s1, %s1314_s19 }
  0x38   : > { %s285_s18 = scalar_lea.vmem [#allocation5], %s1315_s21  ;;  %s282_s22 = scalar_lea.sflag [#allocation6], %s1112_s17 }
  0x39   : > { %s1313_s12 = scalar_select %p1165_p7, 1, 0 }
  0x3a   : > { %s295_s0 = sshll.u32 %s285_s18, 4  ;;  %s884_s30 = scalar_lea.hbm %s1174_s20, 256  ;;  %s296_s0 = int_to_ptr.vmem [resolvable:$true] %s295_s0 }
  0x3b   : > { %p885_p9 = scmp.ne.s32.totalorder %s1174_s20, %s884_s30  ;;  %s889_s19 = scalar_lea.hbm %s1291_s1, 512 }
  0x3c   : > { %p890_p3 = scmp.lt.u32.totalorder %s1174_s20, %s1291_s1  ;;  %p891_p6 = scmp.lt.u32.totalorder %s889_s19, %s884_s30 }
  0x3d   : > { %p887_p11 = pnand %p885_p9, %p856_p5  ;;  %p893_p10 = scmp.lt.u32.totalorder %s884_s30, %s1174_s20 }
  0x3e   : > { %p892_p4 = por %p891_p6, %p890_p3 }
  0x3f   : > { %p888_p13 = pneg %p887_p11 }
  0x40   : > { %p894_p12 = por %p893_p10, %p892_p4 }
  0x42   : > { %p895_p1 = pnand %p894_p12, %p888_p13 }
  0x44   : > { %898 = shalt.err (!%p895_p1)
}
  0x45   : > { %s899_s17 = scalar_lea.vmem %s296_s0, 256  ;;  %s1003_s21 = smov [#allocation5]  }
  0x46   : > { %p900_p2 = scmp.ne.s32.totalorder %s296_s0, %s899_s17  ;;  %s904_s9 = sshll.u32 %s1003_s21, 4  ;;  %s905_s9 = int_to_ptr.vmem [resolvable:$false] %s904_s9 }
  0x47   : > { %s906_s18 = scalar_lea.vmem %s905_s9, 512  ;;  %p907_p8 = scmp.lt.s32.totalorder %s296_s0, %s905_s9 }
  0x48   : > { %p902_p9 = pnand %p900_p2, %p856_p5  ;;  %p908_p7 = scmp.lt.s32.totalorder %s906_s18, %s899_s17 }
  0x4a   : > { %p903_p11 = pneg %p902_p9  ;;  %p909_p3 = por %p908_p7, %p907_p8 }
  0x4c   : > { %p910_p6 = pnand %p909_p3, %p903_p11 }
  0x4e   : > { %913 = shalt.err (!%p910_p6)
}
  0x4f   : > { %788 = dma.hbm_to_vmem [thread:$0]  (!%p1129_p0), %s1174_s20, 256, %s296_s0, %s282_s22  }
  0x50   : > { %p1316_p13 = scmp.ne.s32.totalorder %s1313_s12, 0 }
  0x51   : > { %s1201_s30 = sand.u32 (!%p1316_p13), 1, %s984_s25   ;;  %p1317_p8 = scmp.ne.s32.totalorder (!%p1316_p13), %s1306_s13, 0 }
  0x52   : > { %304 = sbr.rel (%p1316_p13) target bundleno = 580 (0x244), region = 48  ;;  %s1204_s10 = sshll.u32 (!%p1316_p13), %s1201_s30, 4 }
  0x53   : > { %s307_s19 = scalar_lea.sflag (!%p1316_p13), [#allocation3], %s1201_s30  ;;  %s310_s11 = scalar_lea.vmem (!%p1316_p13), [#allocation2], %s1204_s10 }
  0x59   : > { %967 = dma.done.wait (%p1317_p8), %s307_s19, 256  }
  0x5a   : > { %969 = vsyncadd (%p1317_p8), %s307_s19, 4294967040  ;;  %s316_s0 = scalar_lea.sflag [#allocation6], %s1201_s30  ;;  %s319_s8 = scalar_lea.vmem [#allocation5], %s1204_s10 }
  0x5b   : > { %971 = dma.done.wait (%p1317_p8), %s316_s0, 256  }
  0x5c   : > { %973 = vsyncadd (%p1317_p8), %s316_s0, 4294967040  ;;  %v1004_v0 = vmov 0.0   ;;  %v1005_v1 = vmov 0   ;;  %v361_v2 = vld [vmem:[%s319_s8 + $0x8] sm:$0xff]  ;;  %v360_v3 = vld [vmem:[%s319_s8] sm:$0xff]  ;;  %vm364_vm0 = vcmask 64512  }
  0x5d   : > { %432 = vmatprep.mubr.f32.mxu0 %v1004_v0  ;;  %845 = vset.pattern.permute.xlu0 %v1005_v1  ;;  %v363_v4 = vld [vmem:[%s1293_s3] sm:$0xff]  ;;  %v359_v5 = vld [vmem:[%s310_s11 + $0x8] sm:$0xff]  ;;  %s354_s0 = scalar_lea.vmem [#allocation7], %s1204_s10  ;;  %s621_s23 = scalar_lea.sflag [#allocation4], %s1201_s30 }
  0x5e   : > { %597 = vmatprep.mubr.f32.mxu1 %v1004_v0  ;;  %368 = vmatprep.subr.mxu0 %v361_v2  ;;  %v358_v6 = vld [vmem:[%s310_s11] sm:$0xff]  ;;  %s773_s11 = sshll.u32 %s992_s27, 8  ;;  %s637_s8 = sshll.u32 %s354_s0, 4  ;;  %s1243_s8 = int_to_ptr.vmem [resolvable:$true] %s637_s8 }
  0x5f   : > { %369 = vmatpush1.msra.mxu0 %v360_v3  ;;  %v513_v7 = vld [vmem:[%s1295_s5] sm:$0xff]  ;;  %s1241_s22 = scalar_lea.hbm %s1297_s7, %s773_s11  ;;  %s914_s27 = scalar_lea.vmem %s1243_s8, 256 }
  0x60   : > { %761 = vmatmul.mubr.msk.f32.vlgmr.msra.gmra.mrb[0].mxu0 %vm364_vm0, %v363_v4  ;;  %442 = vmatprep.subr.mxu0 %v359_v5  ;;  %v524_v8 = vld [vmem:[%s1296_s6] sm:$0xff]  ;;  %p915_p0 = scmp.ne.s32.totalorder %s1243_s8, %s914_s27  ;;  %p1318_p5 = scmp.ne.s32.totalorder %s1307_s14, 0 }
  0x61   : > { %443 = vmatpush1.msra.mxu0 %v358_v6  ;;  %506 = vmatprep.mubr.f32.mxu0 %v1004_v0  ;;  %v362_v9 = vld [vmem:[%s1292_s2] sm:$0xff]  ;;  %s1006_s10 = smov [#allocation7]  }
  0x62   : > { %516 = vperm.xlu0 %845, %v513_v7   ;;  %v523_v17 = vld [vmem:[%s1294_s4] sm:$0xff]  ;;  %p916_p7 = pnand %p915_p0, %p1318_p5  ;;  %s918_s13 = sshll.u32 %s1006_s10, 4  ;;  %s919_s13 = int_to_ptr.vmem [resolvable:$false] %s918_s13 }
  0x63   : > { %s920_s17 = scalar_lea.vmem %s919_s13, 512  ;;  %p921_p10 = scmp.lt.s32.totalorder %s1243_s8, %s919_s13 }
  0x64   : > { %p917_p4 = pneg %p916_p7  ;;  %p922_p12 = scmp.lt.s32.totalorder %s920_s17, %s914_s27 }
  0x66   : > { %527 = vperm.xlu0 %845, %v524_v8   ;;  %p923_p1 = por %p922_p12, %p921_p10 }
  0x68   : > { %762 = vmatmul.mubr.msk.f32.vlgmr.msra.gmra.mrb[0].mxu0 %vm364_vm0, %v362_v9  ;;  %p924_p2 = pnand %p923_p1, %p917_p4 }
  0xe1   : > { %v517_v10 = vpop.permute.xlu0 %516 }
  0xe5   : > { %v528_v18 = vpop.permute.xlu0 %527 }
 0x13b   : > { %v508_v11 = vpop.f32.mrb[0].mxu0 }
 0x13c   : > { %v519_v12 = vadd.f32 %v517_v10, %v508_v11  ;;  %v510_v13 = vpop.f32.mrb[1].mxu0 }
 0x13d   : > { %v520_v14 = vadd.f32 %v517_v10, %v510_v13 }
 0x13e   : > { %v521_v16 = vmax.f32 %v519_v12, 0.0 }
 0x13f   : > { %v522_v15 = vmax.f32 %v520_v14, 0.0 }
 0x141   : > { %533 = vmatprep.subr.mxu1 %v522_v15 }
 0x142   : > { %534 = vmatpush1.msra.mxu1 %v521_v16 }
 0x143   : > { %763 = vmatmul.mubr.msk.f32.vlgmr.msra.gmra.mrb[0].mxu1 %vm364_vm0, %v523_v17 }
 0x216   : > { %v599_v19 = vpop.f32.mrb[0].mxu1 }
 0x217   : > { %v600_v20 = vadd.f32 %v599_v19, %v528_v18  ;;  %v601_v21 = vpop.f32.mrb[1].mxu1 }
 0x218   : > { %v602_v22 = vadd.f32 %v601_v21, %v528_v18 }
 0x219   : > { %v764_v23 = vmul.f32 -1.442695, %v600_v20 }
 0x21a   : > { %v765_v24 = vmul.f32 -1.442695, %v602_v22 }
 0x21b   : > { %846 = vpow2.f32 %v764_v23 }
 0x21c   : > { %848 = vpow2.f32 %v765_v24 }
 0x225   : > { %v847_v25 = vpop.eup %846 }
 0x226   : > { %v849_v26 = vpop.eup %848  ;;  %v610_v27 = vadd.f32 1.0, %v847_v25 }
 0x227   : > { %v611_v28 = vadd.f32 1.0, %v849_v26 }
 0x228   : > { %850 = vrcp.f32 %v610_v27 }
 0x229   : > { %852 = vrcp.f32 %v611_v28 }
 0x232   : > { %v851_v29 = vpop.eup %850 }
 0x233   : > { %v853_v30 = vpop.eup %852  ;;  %v616_v31 = vmul.f32 %v851_v29, %v360_v3 }
 0x234   : > { %v617_v32 = vmul.f32 %v853_v30, %v361_v2 }
 0x235   : > { %618 = vst [vmem:[%s354_s0] sm:$0xff] %v616_v31 }
 0x236   : > { %619 = vst [vmem:[%s354_s0 + $0x8] sm:$0xff] %v617_v32 }
 0x237   : > { %927 = shalt.err (!%p924_p2)
}
 0x238   : > { %s928_s30 = scalar_lea.hbm %s1241_s22, 256  ;;  %s932_s18 = scalar_lea.hbm %s1297_s7, 512 }
 0x239   : > { %p929_p9 = scmp.ne.s32.totalorder %s1241_s22, %s928_s30  ;;  %p933_p6 = scmp.lt.u32.totalorder %s1241_s22, %s1297_s7 }
 0x23a   : > { %p934_p13 = scmp.lt.u32.totalorder %s932_s18, %s928_s30  ;;  %p936_p0 = scmp.lt.u32.totalorder %s928_s30, %s1241_s22 }
 0x23b   : > { %p930_p11 = pnand %p929_p9, %p1318_p5 }
 0x23c   : > { %p935_p8 = por %p934_p13, %p933_p6 }
 0x23d   : > { %p931_p3 = pneg %p930_p11 }
 0x23e   : > { %p937_p7 = por %p936_p0, %p935_p8 }
 0x240   : > { %p938_p4 = pnand %p937_p7, %p931_p3 }
 0x242   : > { %941 = shalt.err (!%p938_p4)
}
 0x243   : > { %780 = dma.vmem_to_hbm [thread:$0]  (%p1318_p5), %s1243_s8, 256, %s1241_s22, %s621_s23  }
 0x244 PF: > { %s649_s0 = sand.u32 1, %s980_s24   ;;  %p1319_p10 = scmp.ne.s32.totalorder %s1308_s16, 0 }
 0x245   : > { %p1320_p12 = scmp.ge.s32.totalorder %s1000_s29, 2  ;;  %s650_s12 = scalar_lea.sflag [#allocation4], %s649_s0 }
 0x247   : > { %p790_p1 = pnand %p1320_p12, %p1319_p10 }
 0x249   : > { %975 = dma.done.wait (!%p790_p1), %s650_s12, 256  }
 0x24a   : > { %977 = vsyncadd (!%p790_p1), %s650_s12, 4294967040  ;;  %s26_s29 = sadd.s32 1, %s1000_s29   ;;  %s1321_s14 = sld [smem:[#allocation11_spill]] }
 0x24b   : > { %p23_p2 = scmp.ge.s32.totalorder %s26_s29, 4   ;;  %s1322_s24 = smov %s984_s25 }
 0x24c   : > { %s1323_s25 = smov %s988_s26  ;;  %s1324_s26 = smov %s1103_s15 }
 0x24d   : > { %s1325_s27 = smov %s996_s28  ;;  %25 = sbr.rel (!%p23_p2) target bundleno = 10 (0xa), region = 106 }
 0x250   : > { %s1326_s28 = smov %s1321_s14 }
 0x254   :  { %655 = vsyncpa [#allocation3], 1 }
 0x255   :  { %657 = vsyncpa [#allocation3 + $0x1], 1 }
 0x256   :  { %658 = vsyncpa [#allocation6], 1 }
 0x257   :  { %660 = vsyncpa [#allocation6 + $0x1], 1 }
 0x258   :  { %661 = vsyncpa [#allocation4], 1 }
 0x259   :  { %663 = vsyncpa [#allocation4 + $0x1], 1 }

</bundles_post_ra>
